<compile_context>
chip_gen: v7x
topology: tpu7x:2x2x1
jax: 0.10.0
libtpu: 0.0.40
codegen_flags: <defaults>
</compile_context>

<pallas_src>
import jax
import jax.numpy as jnp
from jax import lax
from jax.experimental import pallas as pl
from jax.experimental.pallas import tpu as pltpu

NEG_SLOPE = 0.01  # PyTorch nn.LeakyReLU default
H1, H2 = 20, 16   # hidden widths of the module


def _leaky_relu(x):
    return jnp.where(x > 0, x, NEG_SLOPE * x)


def mlp_kernel(x_ref, w1_ref, b1_ref, w2_ref, b2_ref, w3_ref, b3_ref, o_ref):
    """x_ref: (TB, input_size) native-layout tile; o_ref: (1, TB) lane-dense output."""
    # In-kernel cast for the bf16 path (no-op on the f32 path).
    x = x_ref[...].astype(w1_ref.dtype)                       # (TB, in)

    # fc1: contract on input_size -> (H1, TB); batch stays on the lane axis.
    h1 = lax.dot_general(w1_ref[...], x,
                         dimension_numbers=(((1,), (1,)), ((), ())),
                         preferred_element_type=jnp.float32)   # (H1, TB)
    h1 = _leaky_relu(h1 + b1_ref[...])                         # b1: (H1, 1) broadcasts over lanes

    # fc2: (H2, H1) @ (H1, TB) -> (H2, TB), f32 accumulate.
    h2 = jnp.dot(w2_ref[...], h1.astype(w2_ref.dtype),
                 preferred_element_type=jnp.float32)
    h2 = _leaky_relu(h2 + b2_ref[...])                         # b2: (H2, 1)

    # fc3 (output width 1): keep it off the MXU — VPU mul + cross-sublane reduce.
    out = jnp.sum(h2 * w3_ref[...], axis=0, keepdims=True) + b3_ref[0, 0]   # (1, TB)
    o_ref[...] = out.astype(o_ref.dtype)                       # full lane-dense store


def _vmem_limit_and_budget():
    """Generation-aware scoped-VMEM request + conservative resident-footprint target."""
    cap = 64 << 20  # conservative default = v7x per-core physical VMEM
    try:
        cap = int(pltpu.get_tpu_info().vmem_capacity_bytes)
    except Exception:
        pass
    limit = min(cap // 2, 64 << 20)   # v7x -> 32 MiB, v5e/v6e -> 64 MiB
    budget = int(limit * 0.6)         # headroom for compiler scratch / relayout temps
    return limit, budget


def _choose_batch_tile(batch, input_size, x_itemsize, budget_bytes, max_tile=1 << 16):
    """Lane tile for the batch axis (multiple of 128), grown toward the VMEM budget."""
    # Resident VMEM bytes per batch lane:
    #   x tile (double-buffered)                 : 2 * input_size * itemsize
    #   possible MXU-side relayout copy of x     : input_size * 4
    #   h1 / h2 f32 intermediates                : (H1 + H2) * 4
    #   out tile (f32, double-buffered)          : 2 * 4
    per_lane = 2 * input_size * x_itemsize + input_size * 4 + (H1 + H2) * 4 + 2 * 4
    tb = 128
    while tb * 2 <= max_tile and (tb * 2) * per_lane <= budget_bytes:
        tb *= 2
    # Don't over-pad tiny batches.
    tb = min(tb, max(128, pl.cdiv(batch, 128) * 128))
    return tb


def regression_model_forward(x, params, *, compute_dtype=jnp.float32, batch_tile=None):
    """x: (batch, input_size).  params use PyTorch nn.Linear shapes:
       w1 (20,in), b1 (20,), w2 (16,20), b2 (16,), w3 (1,16), b3 (1,)."""
    w1, b1 = params["w1"], params["b1"]
    w2, b2 = params["w2"], params["b2"]
    w3, b3 = params["w3"], params["b3"]

    batch, input_size = x.shape
    h1_dim, h2_dim = w1.shape[0], w2.shape[0]

    vmem_limit, vmem_budget = _vmem_limit_and_budget()
    tb = batch_tile if batch_tile is not None else _choose_batch_tile(
        batch, input_size, jnp.dtype(x.dtype).itemsize, vmem_budget)
    grid = (pl.cdiv(batch, tb),)

    # Tiny weights: cast once in the wrapper.  x is NOT touched here (cast in-kernel).
    w1c = w1.astype(compute_dtype)
    w2c = w2.astype(compute_dtype)
    b1c = b1.astype(jnp.float32).reshape(h1_dim, 1)
    b2c = b2.astype(jnp.float32).reshape(h2_dim, 1)
    w3c = w3.astype(jnp.float32).reshape(h2_dim, 1)    # (1,16) -> (16,1) column
    b3c = b3.astype(jnp.float32).reshape(1, 1)         # scalar, rides through SMEM

    cd_size = jnp.dtype(compute_dtype).itemsize
    cost = pl.CostEstimate(
        flops=2 * batch * (input_size * h1_dim + h1_dim * h2_dim + h2_dim),
        transcendentals=0,
        bytes_accessed=(batch * input_size * jnp.dtype(x.dtype).itemsize
                        + (h1_dim * input_size + h1_dim * h2_dim) * cd_size
                        + (h1_dim + h2_dim + h2_dim + 1) * 4
                        + batch * 4),
    )

    out = pl.pallas_call(
        mlp_kernel,
        out_shape=jax.ShapeDtypeStruct((1, batch), jnp.float32),
        grid=grid,
        in_specs=[
            pl.BlockSpec((tb, input_size), lambda i: (i, 0)),       # x, native layout
            pl.BlockSpec((h1_dim, input_size), lambda i: (0, 0)),   # W1 (VMEM-resident)
            pl.BlockSpec((h1_dim, 1), lambda i: (0, 0)),            # b1
            pl.BlockSpec((h2_dim, h1_dim), lambda i: (0, 0)),       # W2 (VMEM-resident)
            pl.BlockSpec((h2_dim, 1), lambda i: (0, 0)),            # b2
            pl.BlockSpec((h2_dim, 1), lambda i: (0, 0)),            # w3 column
            pl.BlockSpec(memory_space=pltpu.MemorySpace.SMEM),      # b3 scalar
        ],
        out_specs=pl.BlockSpec((1, tb), lambda i: (0, i)),
        compiler_params=pltpu.CompilerParams(
            dimension_semantics=("parallel",),
            vmem_limit_bytes=vmem_limit),
        cost_estimate=cost,
    )(x, w1c, b1c, w2c, b2c, w3c, b3c)

    return out[0, :].reshape(batch, 1)


def init_params(key, input_size):
    """PyTorch-shaped params (weight: (out, in), bias: (out,)) with Linear-like init."""
    k1, k2, k3, k4, k5, k6 = jax.random.split(key, 6)

    def linear(kw, kb, fan_in, fan_out):
        bound = 1.0 / jnp.sqrt(jnp.float32(fan_in))
        w = jax.random.uniform(kw, (fan_out, fan_in), jnp.float32, -bound, bound)
        b = jax.random.uniform(kb, (fan_out,), jnp.float32, -bound, bound)
        return w, b

    w1, b1 = linear(k1, k2, input_size, H1)
    w2, b2 = linear(k3, k4, H1, H2)
    w3, b3 = linear(k5, k6, H2, 1)
    return {"w1": w1, "b1": b1, "w2": w2, "b2": b2, "w3": w3, "b3": b3}


def reference_forward(x, p):
    hp = lax.Precision.HIGHEST
    a1 = _leaky_relu(jnp.dot(x, p["w1"].T, precision=hp) + p["b1"])
    a2 = _leaky_relu(jnp.dot(a1, p["w2"].T, precision=hp) + p["b2"])
    return jnp.dot(a2, p["w3"].T, precision=hp) + p["b3"]


if __name__ == "__main__":
    key = jax.random.PRNGKey(0)
    kx, kp, kx2 = jax.random.split(key, 3)

    input_size = 32
    params = init_params(kp, input_size)

    # Small batch: single grid step, partial block in both dims.
    batch = 8
    x = jax.random.normal(kx, (batch, input_size), jnp.float32)
    ref = reference_forward(x, params)
    out = jax.block_until_ready(regression_model_forward(x, params))
    assert out.shape == (batch, 1)
    assert jnp.allclose(out, ref, atol=1e-3, rtol=1e-3)

    # Multi-tile grid with a partial edge block (forced small tile).
    batch2 = 300
    x2 = jax.random.normal(kx2, (batch2, input_size), jnp.float32)
    ref2 = reference_forward(x2, params)
    out2 = jax.block_until_ready(
        regression_model_forward(x2, params, batch_tile=128))
    assert out2.shape == (batch2, 1)
    assert jnp.allclose(out2, ref2, atol=1e-3, rtol=1e-3)

    # bf16 MXU-input path (x cast in-kernel), looser tolerance.
    out_bf16 = jax.block_until_ready(
        regression_model_forward(x, params, compute_dtype=jnp.bfloat16))
    assert out_bf16.shape == (batch, 1)
    assert jnp.allclose(out_bf16, ref, atol=5e-2, rtol=5e-2)

    print("KERNEL_OK")
</pallas_src>

<mosaic_0001>
module attributes {stable_mosaic.version = 11 : i64} {
  func.func @mlp_kernel(%arg0: i32, %arg1: memref<128x32xf32, #tpu.memory_space<vmem>>, %arg2: memref<20x32xf32, #tpu.memory_space<vmem>>, %arg3: memref<20x1xf32, #tpu.memory_space<vmem>>, %arg4: memref<16x20xf32, #tpu.memory_space<vmem>>, %arg5: memref<16x1xf32, #tpu.memory_space<vmem>>, %arg6: memref<16x1xf32, #tpu.memory_space<vmem>>, %arg7: memref<1x1xf32, #tpu.memory_space<smem>>, %arg8: memref<1x128xf32, #tpu.memory_space<vmem>>) attributes {dimension_semantics = [#tpu.dimension_semantics<parallel>], iteration_bounds = array<i64: 1>, scalar_prefetch = 0 : i64, scratch_operands = 0 : i64, tpu.core_type = #tpu.core_type<tc>, window_params = [{transform_indices = @transform_0, window_bounds = array<i64: 128, 32>}, {pipeline_mode = #tpu.pipeline_mode<synchronous>, transform_indices = @transform_1, window_bounds = array<i64: 20, 32>}, {pipeline_mode = #tpu.pipeline_mode<synchronous>, transform_indices = @transform_2, window_bounds = array<i64: 20, 1>}, {pipeline_mode = #tpu.pipeline_mode<synchronous>, transform_indices = @transform_3, window_bounds = array<i64: 16, 20>}, {pipeline_mode = #tpu.pipeline_mode<synchronous>, transform_indices = @transform_4, window_bounds = array<i64: 16, 1>}, {pipeline_mode = #tpu.pipeline_mode<synchronous>, transform_indices = @transform_5, window_bounds = array<i64: 16, 1>}, {transform_indices = @transform_6, window_bounds = array<i64: 1, 1>}, {transform_indices = @transform_7, window_bounds = array<i64: 1, 128>}]} {
    %c0 = arith.constant 0 : index
    %c0_0 = arith.constant 0 : index
    %0 = vector.load %arg1[%c0, %c0_0] : memref<128x32xf32, #tpu.memory_space<vmem>>, vector<128x32xf32>
    %c0_1 = arith.constant 0 : index
    %c0_2 = arith.constant 0 : index
    %1 = vector.load %arg2[%c0_1, %c0_2] : memref<20x32xf32, #tpu.memory_space<vmem>>, vector<20x32xf32>
    %cst = arith.constant dense<0.000000e+00> : vector<20x128xf32>
    %2 = tpu.matmul %1, %0, %cst {dimension_numbers = #tpu.dot_dimension_numbers<[1], [1], [0], [0], [0, 0, 1, 0], [], []>} : vector<20x32xf32>, vector<128x32xf32>, vector<20x128xf32> -> vector<20x128xf32>
    %c0_3 = arith.constant 0 : index
    %c0_4 = arith.constant 0 : index
    %3 = vector.load %arg3[%c0_3, %c0_4] : memref<20x1xf32, #tpu.memory_space<vmem>>, vector<20x1xf32>
    %4 = vector.broadcast %3 : vector<20x1xf32> to vector<20x128xf32>
    %5 = arith.addf %2, %4 : vector<20x128xf32>
    %cst_5 = arith.constant 0.000000e+00 : f32
    %6 = vector.broadcast %cst_5 : f32 to vector<20x128xf32>
    %7 = arith.cmpf ogt, %5, %6 : vector<20x128xf32>
    %cst_6 = arith.constant 0.00999999977 : f32
    %8 = vector.broadcast %cst_6 : f32 to vector<20x128xf32>
    %9 = arith.mulf %8, %5 : vector<20x128xf32>
    %10 = arith.select %7, %5, %9 : vector<20x128xi1>, vector<20x128xf32>
    %c0_7 = arith.constant 0 : index
    %c0_8 = arith.constant 0 : index
    %11 = vector.load %arg4[%c0_7, %c0_8] : memref<16x20xf32, #tpu.memory_space<vmem>>, vector<16x20xf32>
    %cst_9 = arith.constant dense<0.000000e+00> : vector<16x128xf32>
    %12 = tpu.matmul %11, %10, %cst_9 {dimension_numbers = #tpu.dot_dimension_numbers<[1], [0], [0], [1], [0, 0, 1, 1], [], []>} : vector<16x20xf32>, vector<20x128xf32>, vector<16x128xf32> -> vector<16x128xf32>
    %c0_10 = arith.constant 0 : index
    %c0_11 = arith.constant 0 : index
    %13 = vector.load %arg5[%c0_10, %c0_11] : memref<16x1xf32, #tpu.memory_space<vmem>>, vector<16x1xf32>
    %14 = vector.broadcast %13 : vector<16x1xf32> to vector<16x128xf32>
    %15 = arith.addf %12, %14 : vector<16x128xf32>
    %cst_12 = arith.constant 0.000000e+00 : f32
    %16 = vector.broadcast %cst_12 : f32 to vector<16x128xf32>
    %17 = arith.cmpf ogt, %15, %16 : vector<16x128xf32>
    %cst_13 = arith.constant 0.00999999977 : f32
    %18 = vector.broadcast %cst_13 : f32 to vector<16x128xf32>
    %19 = arith.mulf %18, %15 : vector<16x128xf32>
    %20 = arith.select %17, %15, %19 : vector<16x128xi1>, vector<16x128xf32>
    %c0_14 = arith.constant 0 : index
    %c0_15 = arith.constant 0 : index
    %21 = vector.load %arg6[%c0_14, %c0_15] : memref<16x1xf32, #tpu.memory_space<vmem>>, vector<16x1xf32>
    %22 = vector.broadcast %21 : vector<16x1xf32> to vector<16x128xf32>
    %23 = arith.mulf %20, %22 : vector<16x128xf32>
    %cst_16 = arith.constant dense<0.000000e+00> : vector<128xf32>
    %24 = vector.multi_reduction <add>, %23, %cst_16 [0] : vector<16x128xf32> to vector<128xf32>
    %25 = vector.shape_cast %24 : vector<128xf32> to vector<1x128xf32>
    %c0_17 = arith.constant 0 : index
    %c0_18 = arith.constant 0 : index
    %26 = memref.load %arg7[%c0_17, %c0_18] : memref<1x1xf32, #tpu.memory_space<smem>>
    %27 = vector.broadcast %26 : f32 to vector<1x128xf32>
    %28 = arith.addf %25, %27 : vector<1x128xf32>
    %c0_19 = arith.constant 0 : index
    %c0_20 = arith.constant 0 : index
    %29 = vector.load %arg8[%c0_19, %c0_20] : memref<1x128xf32, #tpu.memory_space<vmem>>, vector<1x128xf32>
    tpu.vector_store %arg8[%c0_19, %c0_20], %28 {strides = array<i32>} : memref<1x128xf32, #tpu.memory_space<vmem>>, vector<1x128xf32>,
    return
  }
  func.func @transform_0(%arg0: i32) -> (i32, i32) {
    %c0_i32 = arith.constant 0 : i32
    %c0_i32_0 = arith.constant 0 : i32
    return %arg0, %c0_i32 : i32, i32
  }
  func.func @transform_1(%arg0: i32) -> (i32, i32) {
    %c0_i32 = arith.constant 0 : i32
    %c0_i32_0 = arith.constant 0 : i32
    %c0_i32_1 = arith.constant 0 : i32
    return %c0_i32, %c0_i32_0 : i32, i32
  }
  func.func @transform_2(%arg0: i32) -> (i32, i32) {
    %c0_i32 = arith.constant 0 : i32
    %c0_i32_0 = arith.constant 0 : i32
    %c0_i32_1 = arith.constant 0 : i32
    return %c0_i32, %c0_i32_0 : i32, i32
  }
  func.func @transform_3(%arg0: i32) -> (i32, i32) {
    %c0_i32 = arith.constant 0 : i32
    %c0_i32_0 = arith.constant 0 : i32
    %c0_i32_1 = arith.constant 0 : i32
    return %c0_i32, %c0_i32_0 : i32, i32
  }
  func.func @transform_4(%arg0: i32) -> (i32, i32) {
    %c0_i32 = arith.constant 0 : i32
    %c0_i32_0 = arith.constant 0 : i32
    %c0_i32_1 = arith.constant 0 : i32
    return %c0_i32, %c0_i32_0 : i32, i32
  }
  func.func @transform_5(%arg0: i32) -> (i32, i32) {
    %c0_i32 = arith.constant 0 : i32
    %c0_i32_0 = arith.constant 0 : i32
    %c0_i32_1 = arith.constant 0 : i32
    return %c0_i32, %c0_i32_0 : i32, i32
  }
  func.func @transform_6(%arg0: i32) -> (i32, i32) {
    %c0_i32 = arith.constant 0 : i32
    %c0_i32_0 = arith.constant 0 : i32
    %c0_i32_1 = arith.constant 0 : i32
    return %c0_i32, %c0_i32_0 : i32, i32
  }
  func.func @transform_7(%arg0: i32) -> (i32, i32) {
    %c0_i32 = arith.constant 0 : i32
    %c0_i32_0 = arith.constant 0 : i32
    return %c0_i32, %arg0 : i32, i32
  }
}

</mosaic_0001>

<bundles_post_ra>
// kernel: tpu_custom_call.1
= control target key start
LH: loop header
LB: loop body
LE: loop exit
PB: predicated region body
PF: predicated region fallthrough
CT: control target
= control target key end

     0   :  { %vm65_vm0 = vcmask 261120   ;;  %v520_v2 = vmov 0.0|0.0   ;;  %vm521_vm2 = vmmov 0   ;;  %v522_v5 = vmov 0.0   ;;  %s694_s0 = inlined_call_operand.vmem [shape: f32[8,32], index: 0, kind: input, shape index: {}]   ;;  %s695_s1 = inlined_call_operand.vmem [shape: f32[20,32], index: 1, kind: input, shape index: {}]   ;;  %s696_s2 = inlined_call_operand.vmem [shape: f32[20,1], index: 2, kind: input, shape index: {}]   ;;  %s697_s3 = inlined_call_operand.vmem [shape: f32[16,20], index: 3, kind: input, shape index: {}]   ;;  %s698_s4 = inlined_call_operand.vmem [shape: f32[16,1], index: 4, kind: input, shape index: {}]   ;;  %s699_s5 = inlined_call_operand.vmem [shape: f32[16,1], index: 5, kind: input, shape index: {}]   ;;  %s700_s6 = inlined_call_operand.<no memory space> [shape: f32[1,1], index: 6, kind: input, shape index: {}]   ;;  %s701_s7 = inlined_call_operand.hbm [shape: f32[1,8], index: 7, kind: output, shape index: {}]  }
   0x1   :  { %v28_v0 = vld [vmem:[%s694_s0] sm:$0xff]  ;;  %v29_v1 = vld [vmem:[%s694_s0 + $0x8] sm:$0xff]  ;;  %453 = vmatprep.subr.bf16.mxu0 %v520_v2  ;;  %vm573_vm1 = vmpackc.low %vm65_vm0, %vm65_vm0  ;;  %435 = vmatprep.mubr.msk.f32.mxu0 %vm521_vm2, %v522_v5  ;;  %v523_v6 = vmov 0  }
   0x2   :  { %v454_v3 = vpack.c.bf16 %v29_v1, %v28_v0  ;;  %494 = vset.pattern.permute.xlu0 %v523_v6  ;;  %495 = vset.pattern.permute.xlu1 %v523_v6  ;;  %v30_v7 = vld [vmem:[%s694_s0 + $0x10] sm:$0xff]  ;;  %v31_v8 = vld [vmem:[%s694_s0 + $0x18] sm:$0xff]  ;;  %v47_v9 = vld [vmem:[%s696_s2] sm:$0xff] }
   0x3   :  { %v458_v10 = vpack.c.bf16 %v31_v8, %v30_v7  ;;  %52 = vperm.xlu0 %494, %v47_v9   ;;  %v48_v11 = vld [vmem:[%s696_s2 + $0x8] sm:$0xff]  ;;  %v49_v12 = vld [vmem:[%s696_s2 + $0x10] sm:$0xf] }
   0x4   :  { %456 = vmatpush3.bf16.xpose.msk.msra.mxu0 %vm573_vm1, %v454_v3  ;;  %62 = vperm.xlu1 %495, %v49_v12  }
   0x5   :  { %457 = vmatprep.subr.bf16.mxu0 %v520_v2 }
   0x6   :  { %13 = vsyncpa [#allocation4], 0  ;;  %v214_v13 = vld [vmem:[%s698_s4] sm:$0xff]  ;;  %v33_v15 = vld [vmem:[%s694_s0 + $0x28] sm:$0xff]  ;;  %vm226_vm3 = vcmask 162816   ;;  %vm233_vm7 = vcmask 1043456  }
   0x7   :  { %57 = vperm.xlu0 %494, %v48_v11   ;;  %v32_v14 = vld [vmem:[%s694_s0 + $0x20] sm:$0xff]  ;;  %v215_v16 = vld [vmem:[%s698_s4 + $0x8] sm:$0xff]  ;;  %v34_v20 = vld [vmem:[%s694_s0 + $0x30] sm:$0xff]  ;;  %s524_s28 = smov [#allocation3]  }
   0x8   :  { %218 = vperm.xlu1 %495, %v214_v13   ;;  %v318_v17 = vld [vmem:[%s699_s5] sm:$0xff]  ;;  %v462_v18 = vpack.c.bf16 %v33_v15, %v32_v14  ;;  %v319_v19 = vld [vmem:[%s699_s5 + $0x8] sm:$0xff]  ;;  %v35_v21 = vld [vmem:[%s694_s0 + $0x38] sm:$0xff]  ;;  %v340_v15 = vstv %s700_s6  ;;  %s349_s5 = sshll.u32 %s524_s28, 4  ;;  %s350_s5 = int_to_ptr.vmem [resolvable:$true] %s349_s5 }
   0x9   :  { %v466_v22 = vpack.c.bf16 %v35_v21, %v34_v20  ;;  %v36_v23 = vld [vmem:[%s694_s0 + $0x40] sm:$0xff]  ;;  %v37_v24 = vld [vmem:[%s694_s0 + $0x48] sm:$0xff]  ;;  %v38_v26 = vld [vmem:[%s694_s0 + $0x50] sm:$0xff]  ;;  %s496_s29 = scalar_lea.vmem %s350_s5, 16  ;;  %s500_s30 = scalar_lea.vmem %s350_s5, 32 }
   0xa   :  { %v470_v25 = vpack.c.bf16 %v37_v24, %v36_v23  ;;  %v39_v27 = vld [vmem:[%s694_s0 + $0x58] sm:$0xff]  ;;  %v40_v29 = vld [vmem:[%s694_s0 + $0x60] sm:$0xff]  ;;  %v41_v30 = vld [vmem:[%s694_s0 + $0x68] sm:$0xff]  ;;  %p497_p0 = scmp.ne.s32.totalorder %s350_s5, %s496_s29  ;;  %p501_p1 = scmp.lt.s32.totalorder %s350_s5, %s350_s5 }
   0xb   :  { %223 = vperm.xlu0 %494, %v215_v16   ;;  %v474_v28 = vpack.c.bf16 %v39_v27, %v38_v26  ;;  %v478_v31 = vpack.c.bf16 %v41_v30, %v40_v29  ;;  %v42_v32 = vld [vmem:[%s694_s0 + $0x70] sm:$0xff]  ;;  %v43_v33 = vld [vmem:[%s694_s0 + $0x78] sm:$0xff]  ;;  %v44_v35 = vld [vmem:[%s695_s1] sm:$0xff]  ;;  %p502_p2 = scmp.lt.s32.totalorder %s500_s30, %s496_s29 }
   0xc   :  { %460 = vmatpush3.bf16.xpose.msk.msra.mxu0 %vm573_vm1, %v458_v10  ;;  %322 = vperm.xlu1 %495, %v318_v17   ;;  %v482_v34 = vpack.c.bf16 %v43_v33, %v42_v32  ;;  %v45_v36 = vld [vmem:[%s695_s1 + $0x8] sm:$0xff]  ;;  %v46_v37 = vld [vmem:[%s695_s1 + $0x10] sm:$0xf]  ;;  %v212_v38 = vld [vmem:[%s697_s3] sm:$0xff] }
   0xd   :  { %461 = vmatprep.subr.bf16.mxu0 %v520_v2  ;;  %450 = vmatprep.mubr.msk.f32.mxu1 %vm226_vm3, %v212_v38  ;;  %v213_v58 = vld [vmem:[%s697_s3 + $0x8] sm:$0xff]  ;;  %p503_p3 = por %p502_p2, %p501_p1 }
   0xf   :  { %327 = vperm.xlu0 %494, %v319_v19   ;;  %p504_p4 = pnand %p503_p3, %p497_p0 }
  0x14   :  { %464 = vmatpush3.bf16.xpose.msk.msra.mxu0 %vm573_vm1, %v462_v18 }
  0x15   :  { %465 = vmatprep.subr.bf16.mxu0 %v520_v2 }
  0x1c   :  { %468 = vmatpush3.bf16.xpose.msk.msra.mxu0 %vm573_vm1, %v466_v22 }
  0x1d   :  { %469 = vmatprep.subr.bf16.mxu0 %v520_v2 }
  0x24   :  { %472 = vmatpush3.bf16.xpose.msk.msra.mxu0 %vm573_vm1, %v470_v25 }
  0x25   :  { %473 = vmatprep.subr.bf16.mxu0 %v520_v2 }
  0x2c   :  { %476 = vmatpush3.bf16.xpose.msk.msra.mxu0 %vm573_vm1, %v474_v28 }
  0x2d   :  { %477 = vmatprep.subr.bf16.mxu0 %v520_v2 }
  0x34   :  { %480 = vmatpush3.bf16.xpose.msk.msra.mxu0 %vm573_vm1, %v478_v31 }
  0x35   :  { %481 = vmatprep.subr.bf16.mxu0 %v520_v2 }
  0x3c   :  { %484 = vmatpush3.bf16.xpose.msk.msra.mxu0 %vm573_vm1, %v482_v34 }
  0x43   :  { %436 = vmatmul.mubr.msk.f32.vlgmr.msra.gmra.mrb[0].mxu0 %vm65_vm0, %v44_v35 }
  0x44   :  { %438 = vmatprep.mubr.msk.f32.mxu0 %vm521_vm2, %v522_v5 }
  0x47   :  { %439 = vmatmul.mubr.msk.f32.gmra.mrb[2].mxu0 %vm65_vm0, %v45_v36 }
  0x48   :  { %441 = vmatprep.mubr.msk.f32.mxu0 %vm521_vm2, %v522_v5 }
  0x4b   :  { %442 = vmatmul.mubr.msk.f32.gmra.mrb[4].mxu0 %vm65_vm0, %v46_v37 }
  0x82   :  { %v53_v39 = vpop.permute.xlu0 %52 }
  0x83   :  { %v63_v49 = vpop.permute.xlu1 %62 }
  0x86   :  { %v58_v43 = vpop.permute.xlu0 %57 }
  0x87   :  { %v219_v60 = vpop.permute.xlu1 %218 }
  0x8a   :  { %v224_v59 = vpop.permute.xlu0 %223 }
  0x8b   :  { %v323_v5 = vpop.permute.xlu1 %322 }
  0x8e   :  { %v328_v3 = vpop.permute.xlu0 %327 }
 0x116   :  { %v189_v40 = vpop.f32.mrb[0].mxu0 }
 0x117   :  { %v190_v41 = vadd.f32 %v189_v40, %v53_v39  ;;  %v437_v42 = vpop.f32.mrb[1].mxu0 }
 0x119   :  { %v206_v45 = vmul.f32 0.01, %v190_v41  ;;  %vm203_vm4 = vcmp.gt.f32.partialorder %v190_v41, 0.0 }
 0x11a   :  { %v194_v44 = vpop.f32.mrb[2].mxu0 }
 0x11b   :  { %v195_v46 = vadd.f32 %v194_v44, %v58_v43  ;;  %v440_v47 = vpop.f32.mrb[3].mxu0  ;;  %v209_v53 = vsel %vm203_vm4, %v190_v41, %v206_v45 }
 0x11d   :  { %v207_v48 = vmul.f32 0.01, %v195_v46  ;;  %vm204_vm5 = vcmp.gt.f32.partialorder %v195_v46, 0.0 }
 0x11e   :  { %v199_v50 = vpop.f32.mrb[4].mxu0 }
 0x11f   :  { %v200_v51 = vadd.f32 %v199_v50, %v63_v49  ;;  %v443_v52 = vpop.f32.mrb[5].mxu0  ;;  %v210_v54 = vsel %vm204_vm5, %v195_v46, %v207_v48 }
 0x120   :  { %v485_v55 = vpack.c.bf16 %v210_v54, %v209_v53 }
 0x121   :  { %vm205_vm6 = vcmp.gt.f32.partialorder %v200_v51, 0.0  ;;  %v208_v56 = vmul.f32 0.01, %v200_v51 }
 0x122   :  { %486 = vmatprep.subr.bf16.mxu1 %v485_v55 }
 0x123   :  { %488 = vmatpush3.bf16.msra.mxu1 %v485_v55  ;;  %v211_v57 = vsel %vm205_vm6, %v200_v51, %v208_v56 }
 0x124   :  { %448 = vmatprep.subr.msk.mxu1 %vm233_vm7, %v211_v57 }
 0x127   :  { %449 = vmatpush3.msk.msra.mxu1 %vm233_vm7, %v211_v57 }
 0x128   :  { %451 = vmatmul.mubr.msk.f32.vlgmr.msra.gmra.mrb[0].mxu1 %vm226_vm3, %v213_v58 }
 0x1fb   :  { %v452_v61 = vpop.f32.mrb[0].mxu1 }
 0x1fc   :  { %v309_v62 = vadd.f32 %v452_v61, %v224_v59  ;;  %v303_v63 = vpop.f32.mrb[1].mxu1 }
 0x1fd   :  { %v304_v0 = vadd.f32 %v303_v63, %v219_v60 }
 0x1fe   :  { %vm313_vm8 = vcmp.gt.f32.partialorder %v309_v62, 0.0  ;;  %v315_v1 = vmul.f32 0.01, %v309_v62 }
 0x1ff   :  { %vm312_vm9 = vcmp.gt.f32.partialorder %v304_v0, 0.0  ;;  %v314_v2 = vmul.f32 0.01, %v304_v0 }
 0x200   :  { %v317_v4 = vsel %vm313_vm8, %v309_v62, %v315_v1 }
 0x201   :  { %v331_v6 = vmul.f32 %v328_v3, %v317_v4  ;;  %v316_v7 = vsel %vm312_vm9, %v304_v0, %v314_v2 }
 0x202   :  { %v330_v8 = vmul.f32 %v323_v5, %v316_v7 }
 0x204   :  { %v332_v9 = vadd.f32 %v331_v6, %v330_v8 }
 0x206   :  { %v333_v10 = vrot.slane %v332_v9, 4 }
 0x208   :  { %v334_v11 = vadd.f32 %v333_v10, %v332_v9 }
 0x20a   :  { %v335_v12 = vrot.slane %v334_v11, 2 }
 0x20c   :  { %v336_v13 = vadd.f32 %v335_v12, %v334_v11 }
 0x20e   :  { %v337_v14 = vrot.slane %v336_v13, 1 }
 0x210   :  { %v338_v16 = vadd.f32 %v337_v14, %v336_v13 }
 0x212   :  { %v341_v17 = vadd.f32 %v340_v15, %v338_v16 }
 0x214   :  { %342 = vst [vmem:[#allocation3] sm:$0x1] %v341_v17 }
 0x215   :  { %507 = shalt.err (!%p504_p4)
}
 0x216   :  { %s508_s10 = scalar_lea.hbm %s701_s7, 16 }
 0x217   :  { %p509_p5 = scmp.ne.s32.totalorder %s701_s7, %s508_s10  ;;  %p512_p6 = scmp.lt.u32.totalorder %s508_s10, %s701_s7 }
 0x219   :  { %p514_p7 = pnand %p512_p6, %p509_p5 }
 0x21b   :  { %517 = shalt.err (!%p514_p7)
}
 0x21c   :  { %352 = dma.vmem_to_hbm [thread:$0]  %s350_s5, 16, %s701_s7, [#allocation4]  }
 0x21d   :  { %518 = dma.done.wait [#allocation4], 16  }
 0x21e   :  { %519 = vsyncadd [#allocation4], 4294967280 }
 0x21f   :  { %356 = vsyncpa [#allocation4], 1 }

</bundles_post_ra>
